<compile_context>
chip_gen: v5e
topology: v5e:2x2
jax: 0.10.0
libtpu: 0.0.40
codegen_flags: <defaults>
</compile_context>

<pallas_src>
import functools
import math

import jax
import jax.numpy as jnp
from jax.experimental import pallas as pl
from jax.experimental.pallas import tpu as pltpu


def _round_up(x, m):
    return ((x + m - 1) // m) * m


def _focal_loss_kernel(x_ref, lbl_ref, out_ref, *, gamma, ignore_lb,
                       num_classes, hw, tile):
    j = pl.program_id(1)

    x = x_ref[...]                                       # (C, T), input dtype
    lbl = lbl_ref[...]                                   # (1, T) int32

    # softmax / log-softmax statistics over the channel (sublane) axis.
    # Pre-exp elementwise work stays in the input dtype (bf16 VALU on
    # v6e/v7x); exp/sum/log run in f32 for accuracy.
    m = jnp.max(x, axis=0, keepdims=True)                # (1, T)
    xs = (x - m).astype(jnp.float32)                     # (C, T) f32
    e = jnp.exp(xs)                                      # (C, T)
    s = jnp.sum(e, axis=0, keepdims=True)                # (1, T)
    log_s = jnp.log(s)                                   # (1, T)

    # One-hot gather of the target channel (C is small -> cheap VPU work).
    onehot = (jax.lax.broadcasted_iota(jnp.int32, xs.shape, 0) == lbl)
    xs_y = jnp.sum(onehot.astype(jnp.float32) * xs,
                   axis=0, keepdims=True)                # (x_y - m), (1, T)

    logp_y = xs_y - log_s                                # log_softmax at target
    p_y = jnp.exp(logp_y)                                # softmax at target (EUP)
    base = jnp.maximum(1.0 - p_y, 0.0)

    g = float(gamma)
    if g == int(g) and 0 <= int(g) <= 8:
        # Integer gamma: pure multiplies, no pow transcendentals.
        factor = jnp.ones_like(base)
        for _ in range(int(g)):
            factor = factor * base
    else:
        factor = jnp.exp(g * jnp.log(jnp.maximum(base, 1e-30)))

    # Validity straight from the label vector + ragged-tile lane mask.
    # NOTE: out-of-range labels (!= ignore_lb) are treated as ignored here;
    # PyTorch NLLLoss would raise for them, so this only matters for
    # malformed data.
    pos = j * tile + jax.lax.broadcasted_iota(jnp.int32, lbl.shape, 1)
    in_bounds = pos < hw
    valid = jnp.logical_and(
        in_bounds,
        jnp.logical_and(lbl != ignore_lb,
                        jnp.logical_and(lbl >= 0, lbl < num_classes)))

    pix_loss = jnp.where(valid, -factor * logp_y, 0.0)   # (1, T)
    loss_sum = jnp.sum(pix_loss)
    cnt_sum = jnp.sum(valid.astype(jnp.float32))

    # Lane-dense (2, 128) per-tile partial: row 0 = loss sum, row 1 = count.
    row = jax.lax.broadcasted_iota(jnp.int32, (2, 128), 0)
    out_ref[...] = jnp.where(row == 0, loss_sum, cnt_sum).astype(jnp.float32)


def _vmem_capacity_bytes():
    try:
        info = pltpu.get_tpu_info()
        cap = getattr(info, "vmem_capacity_bytes", None)
        if cap:
            return int(cap)
    except Exception:
        pass
    return 128 * 1024 * 1024


def softmax_focal_loss(logits, labels, gamma, ignore_lb=255, tile_hw=None):
    """logits: (N, C, H, W) float32/bfloat16; labels: (N, H, W) int. Scalar f32 loss."""
    n, c, h, w = logits.shape
    hw = h * w
    x = logits.reshape(n, c, hw)
    lbl = labels.reshape(n, 1, hw).astype(jnp.int32)

    c_pad = _round_up(c, 8)
    dtype_bytes = jnp.dtype(logits.dtype).itemsize
    vmem_cap = _vmem_capacity_bytes()
    small_vmem = vmem_cap <= 64 * 1024 * 1024            # v7x-class part

    # Lane tile: multiple of 128, sized so the f32 (C_pad, TILE) working slab
    # is ~1.5 MiB on 64 MiB-VMEM parts and ~3 MiB on 128 MiB parts (amortizes
    # the ~0.35 us per-grid-step overhead), never larger than the 128-padded
    # spatial extent.  No HBM-side padding of the logits is ever done.
    hw128 = _round_up(hw, 128)
    if tile_hw is None:
        target_bytes = (3 << 20) // 2 if small_vmem else (3 << 20)
        tile_hw = max(128, ((target_bytes // (c_pad * 4)) // 128) * 128)
    tile = min(_round_up(int(tile_hw), 128), hw128)
    num_tiles = math.ceil(hw / tile)

    # Generation-aware VMEM budget from actual usage: double-buffered input
    # blocks (logits + labels), ~6 f32 (C_pad, TILE) intermediates, tiny output.
    in_block = c_pad * tile * dtype_bytes + 8 * tile * 4
    interm = 6 * c_pad * tile * 4
    need = 2 * in_block + interm + 2 * 8 * 128 * 4
    cap = (48 << 20) if small_vmem else (100 << 20)
    vmem_limit = int(min(cap, max(16 << 20, int(need * 1.5))))

    kernel = functools.partial(_focal_loss_kernel, gamma=float(gamma),
                               ignore_lb=int(ignore_lb), num_classes=c,
                               hw=hw, tile=tile)

    # TODO(synk): if profiling still shows exposed DMA per step, bump the
    # logits BlockSpec to pipeline_mode=pl.Buffered(3).
    partials = pl.pallas_call(
        kernel,
        out_shape=jax.ShapeDtypeStruct((n, num_tiles, 2, 128), jnp.float32),
        grid_spec=pltpu.PrefetchScalarGridSpec(
            num_scalar_prefetch=0,
            grid=(n, num_tiles),
            in_specs=[
                pl.BlockSpec((None, c, tile), lambda i, j: (i, 0, j)),
                pl.BlockSpec((None, 1, tile), lambda i, j: (i, 0, j)),
            ],
            out_specs=pl.BlockSpec((None, None, 2, 128),
                                   lambda i, j: (i, j, 0, 0)),
        ),
        # Each grid step owns a distinct output block -> both axes can be
        # sharded across TensorCores (v7x megacore).
        compiler_params=pltpu.CompilerParams(
            dimension_semantics=("parallel", "parallel"),
            vmem_limit_bytes=vmem_limit),
    )(x, lbl)

    # Final reduction of the tiny per-tile partials in plain JAX.
    loss_total = jnp.sum(partials[:, :, 0, 0])
    cnt_total = jnp.sum(partials[:, :, 1, 0])
    # NLLLoss 'mean' over non-ignored pixels (guarded for the all-ignored case).
    return loss_total / jnp.maximum(cnt_total, 1.0)


def _reference(logits, labels, gamma, ignore_lb=255):
    """Pure-JAX mirror of the PyTorch forward (NLLLoss mean over valid pixels)."""
    logits = logits.astype(jnp.float32)
    logp = jax.nn.log_softmax(logits, axis=1)
    p = jnp.exp(logp)
    weighted = jnp.power(1.0 - p, gamma) * logp
    valid = labels != ignore_lb
    safe = jnp.where(valid, labels, 0).astype(jnp.int32)
    gathered = jnp.take_along_axis(weighted, safe[:, None, :, :], axis=1)[:, 0]
    loss = jnp.where(valid, -gathered, 0.0)
    return jnp.sum(loss) / jnp.maximum(jnp.sum(valid.astype(jnp.float32)), 1.0)


if __name__ == "__main__":
    key = jax.random.PRNGKey(0)
    k1, k2, k3 = jax.random.split(key, 3)
    n, c, h, w = 2, 4, 16, 16
    gamma = 2.0
    ignore_lb = 255

    logits = jax.random.normal(k1, (n, c, h, w), dtype=jnp.float32) * 3.0
    labels = jax.random.randint(k2, (n, h, w), 0, c, dtype=jnp.int32)
    # Sprinkle ignored pixels to exercise ignore_index.
    ignore_mask = jax.random.bernoulli(k3, 0.1, (n, h, w))
    labels = jnp.where(ignore_mask, ignore_lb, labels)

    loss = softmax_focal_loss(logits, labels, gamma, ignore_lb)
    jax.block_until_ready(loss)

    ref = _reference(logits, labels, gamma, ignore_lb)
    assert jnp.allclose(loss, ref, rtol=1e-4, atol=1e-6), (loss, ref)

    print("KERNEL_OK")
</pallas_src>

<mosaic_0001>
module attributes {stable_mosaic.version = 11 : i64} {
  func.func @_focal_loss_kernel(%arg0: i32, %arg1: i32, %arg2: memref<1x4x256xf32, #tpu.memory_space<vmem>>, %arg3: memref<1x1x256xi32, #tpu.memory_space<vmem>>, %arg4: memref<1x1x2x128xf32, #tpu.memory_space<vmem>>) attributes {dimension_semantics = [#tpu.dimension_semantics<parallel>, #tpu.dimension_semantics<parallel>], iteration_bounds = array<i64: 2, 1>, scalar_prefetch = 0 : i64, scratch_operands = 0 : i64, tpu.core_type = #tpu.core_type<tc>, window_params = [{transform_indices = @transform_0, window_bounds = array<i64: 1, 4, 256>}, {transform_indices = @transform_1, window_bounds = array<i64: 1, 1, 256>}, {transform_indices = @transform_2, window_bounds = array<i64: 1, 1, 2, 128>}]} {
    %c0 = arith.constant 0 : index
    %c0_0 = arith.constant 0 : index
    %c0_1 = arith.constant 0 : index
    %0 = vector.load %arg2[%c0, %c0_0, %c0_1] : memref<1x4x256xf32, #tpu.memory_space<vmem>>, vector<1x4x256xf32>
    %1 = vector.shape_cast %0 : vector<1x4x256xf32> to vector<4x256xf32>
    %c0_2 = arith.constant 0 : index
    %c0_3 = arith.constant 0 : index
    %c0_4 = arith.constant 0 : index
    %2 = vector.load %arg3[%c0_2, %c0_3, %c0_4] : memref<1x1x256xi32, #tpu.memory_space<vmem>>, vector<1x1x256xi32>
    %3 = vector.shape_cast %2 : vector<1x1x256xi32> to vector<1x256xi32>
    %cst = arith.constant dense<0xFF800000> : vector<256xf32>
    %4 = vector.multi_reduction <maximumf>, %1, %cst [0] : vector<4x256xf32> to vector<256xf32>
    %5 = vector.shape_cast %4 : vector<256xf32> to vector<1x256xf32>
    %6 = vector.broadcast %5 : vector<1x256xf32> to vector<4x256xf32>
    %7 = arith.subf %1, %6 : vector<4x256xf32>
    %8 = math.exp %7 : vector<4x256xf32>
    %cst_5 = arith.constant dense<0.000000e+00> : vector<256xf32>
    %9 = vector.multi_reduction <add>, %8, %cst_5 [0] : vector<4x256xf32> to vector<256xf32>
    %10 = vector.shape_cast %9 : vector<256xf32> to vector<1x256xf32>
    %11 = math.log %10 : vector<1x256xf32>
    %12 = tpu.iota {dimensions = array<i32: 0>} : vector<4x256xi32>
    %13 = vector.broadcast %3 : vector<1x256xi32> to vector<4x256xi32>
    %14 = arith.cmpi eq, %12, %13 : vector<4x256xi32>
    %15 = arith.extui %14 : vector<4x256xi1> to vector<4x256xi32>
    %16 = arith.sitofp %15 : vector<4x256xi32> to vector<4x256xf32>
    %17 = arith.mulf %16, %7 : vector<4x256xf32>
    %cst_6 = arith.constant dense<0.000000e+00> : vector<256xf32>
    %18 = vector.multi_reduction <add>, %17, %cst_6 [0] : vector<4x256xf32> to vector<256xf32>
    %19 = vector.shape_cast %18 : vector<256xf32> to vector<1x256xf32>
    %20 = arith.subf %19, %11 : vector<1x256xf32>
    %21 = math.exp %20 : vector<1x256xf32>
    %cst_7 = arith.constant 1.000000e+00 : f32
    %22 = vector.broadcast %cst_7 : f32 to vector<1x256xf32>
    %23 = arith.subf %22, %21 : vector<1x256xf32>
    %cst_8 = arith.constant 0.000000e+00 : f32
    %24 = vector.broadcast %cst_8 : f32 to vector<1x256xf32>
    %25 = arith.maximumf %23, %24 : vector<1x256xf32>
    %cst_9 = arith.constant 1.000000e+00 : f32
    %26 = vector.broadcast %cst_9 : f32 to vector<1x256xf32>
    %27 = arith.mulf %26, %25 : vector<1x256xf32>
    %28 = arith.mulf %27, %25 : vector<1x256xf32>
    %c256_i32 = arith.constant 256 : i32
    %29 = arith.muli %arg1, %c256_i32 : i32
    %30 = tpu.iota {dimensions = array<i32: 1>} : vector<1x256xi32>
    %31 = vector.broadcast %29 : i32 to vector<1x256xi32>
    %32 = arith.addi %31, %30 : vector<1x256xi32>
    %c256_i32_10 = arith.constant 256 : i32
    %33 = vector.broadcast %c256_i32_10 : i32 to vector<1x256xi32>
    %34 = arith.cmpi slt, %32, %33 : vector<1x256xi32>
    %c255_i32 = arith.constant 255 : i32
    %35 = vector.broadcast %c255_i32 : i32 to vector<1x256xi32>
    %36 = arith.cmpi ne, %3, %35 : vector<1x256xi32>
    %c0_i32 = arith.constant 0 : i32
    %37 = vector.broadcast %c0_i32 : i32 to vector<1x256xi32>
    %38 = arith.cmpi sge, %3, %37 : vector<1x256xi32>
    %c4_i32 = arith.constant 4 : i32
    %39 = vector.broadcast %c4_i32 : i32 to vector<1x256xi32>
    %40 = arith.cmpi slt, %3, %39 : vector<1x256xi32>
    %41 = arith.andi %38, %40 : vector<1x256xi1>
    %42 = arith.andi %36, %41 : vector<1x256xi1>
    %43 = arith.andi %34, %42 : vector<1x256xi1>
    %cst_11 = arith.constant 0.000000e+00 : f32
    %44 = vector.broadcast %cst_11 : f32 to vector<1x256xf32>
    %45 = arith.subf %44, %28 : vector<1x256xf32>
    %46 = arith.mulf %45, %20 : vector<1x256xf32>
    %cst_12 = arith.constant 0.000000e+00 : f32
    %47 = vector.broadcast %cst_12 : f32 to vector<1x256xf32>
    %48 = arith.select %43, %46, %47 : vector<1x256xi1>, vector<1x256xf32>
    %49 = vector.shape_cast %48 : vector<1x256xf32> to vector<1x1x256xf32>
    %cst_13 = arith.constant dense<0.000000e+00> : vector<1xf32>
    %50 = vector.multi_reduction <add>, %49, %cst_13 [1, 2] : vector<1x1x256xf32> to vector<1xf32>
    %51 = vector.shape_cast %50 : vector<1xf32> to vector<1x1x1xf32>
    %52 = vector.extract %51[0, 0, 0] : f32 from vector<1x1x1xf32>
    %53 = arith.extui %43 : vector<1x256xi1> to vector<1x256xi32>
    %54 = arith.sitofp %53 : vector<1x256xi32> to vector<1x256xf32>
    %55 = vector.shape_cast %54 : vector<1x256xf32> to vector<1x1x256xf32>
    %cst_14 = arith.constant dense<0.000000e+00> : vector<1xf32>
    %56 = vector.multi_reduction <add>, %55, %cst_14 [1, 2] : vector<1x1x256xf32> to vector<1xf32>
    %57 = vector.shape_cast %56 : vector<1xf32> to vector<1x1x1xf32>
    %58 = vector.extract %57[0, 0, 0] : f32 from vector<1x1x1xf32>
    %59 = tpu.iota {dimensions = array<i32: 0>} : vector<2x128xi32>
    %c0_i32_15 = arith.constant 0 : i32
    %60 = vector.broadcast %c0_i32_15 : i32 to vector<2x128xi32>
    %61 = arith.cmpi eq, %59, %60 : vector<2x128xi32>
    %62 = vector.broadcast %52 : f32 to vector<2x128xf32>
    %63 = vector.broadcast %58 : f32 to vector<2x128xf32>
    %64 = arith.select %61, %62, %63 : vector<2x128xi1>, vector<2x128xf32>
    %c0_16 = arith.constant 0 : index
    %c0_17 = arith.constant 0 : index
    %c0_18 = arith.constant 0 : index
    %c0_19 = arith.constant 0 : index
    %65 = vector.load %arg4[%c0_16, %c0_17, %c0_18, %c0_19] : memref<1x1x2x128xf32, #tpu.memory_space<vmem>>, vector<1x1x2x128xf32>
    %66 = vector.shape_cast %65 : vector<1x1x2x128xf32> to vector<2x128xf32>
    %67 = vector.shape_cast %64 : vector<2x128xf32> to vector<1x1x2x128xf32>
    tpu.vector_store %arg4[%c0_16, %c0_17, %c0_18, %c0_19], %67 {strides = array<i32>} : memref<1x1x2x128xf32, #tpu.memory_space<vmem>>, vector<1x1x2x128xf32>,
    return
  }
  func.func @transform_0(%arg0: i32, %arg1: i32) -> (i32, i32, i32) {
    %c0_i32 = arith.constant 0 : i32
    %c0_i32_0 = arith.constant 0 : i32
    return %arg0, %c0_i32, %arg1 : i32, i32, i32
  }
  func.func @transform_1(%arg0: i32, %arg1: i32) -> (i32, i32, i32) {
    %c0_i32 = arith.constant 0 : i32
    %c0_i32_0 = arith.constant 0 : i32
    return %arg0, %c0_i32, %arg1 : i32, i32, i32
  }
  func.func @transform_2(%arg0: i32, %arg1: i32) -> (i32, i32, i32, i32) {
    %c0_i32 = arith.constant 0 : i32
    %c0_i32_0 = arith.constant 0 : i32
    %c0_i32_1 = arith.constant 0 : i32
    return %arg0, %arg1, %c0_i32, %c0_i32_0 : i32, i32, i32, i32
  }
}

</mosaic_0001>

<bundles_post_ra>
// kernel: tpu_custom_call.1
= control target key start
LH: loop header
LB: loop body
LE: loop exit
PB: predicated region body
PF: predicated region fallthrough
CT: control target
= control target key end

     0   :  { %7 = vsyncpa [#allocation3], 0  ;;  %s937_s0 = inlined_call_operand.hbm [shape: f32[2,4,256], index: 0, kind: input, shape index: {}]   ;;  %s938_s1 = inlined_call_operand.hbm [shape: s32[2,1,256], index: 1, kind: input, shape index: {}]   ;;  %s939_s2 = inlined_call_operand.hbm [shape: f32[2,1,2,128], index: 2, kind: output, shape index: {}]  }
   0x1   :  { %9 = vsyncpa [#allocation3 + $0x1], 0 }
   0x2   :  { %10 = vsyncpa [#allocation6], 0 }
   0x3   :  { %12 = vsyncpa [#allocation6 + $0x1], 0 }
   0x4   :  { %13 = vsyncpa [#allocation4], 0 }
   0x5   :  { %15 = vsyncpa [#allocation4 + $0x1], 0  ;;  %s779_s9 = smov 0   ;;  %s781_s10 = smov 0  }
   0x6   :  { %s783_s11 = smov 0   ;;  %s785_s12 = smov 0  }
   0x7   :  { %s787_s13 = smov 0   ;;  %s789_s14 = smov 0  }
   0x8 LB: > { %s509_s15 = sadd.s32 4294967295, %s760_s14   ;;  %s510_s16 = sadd.s32 4294967294, %s760_s14   ;;  %s760_s14 = sphi %s789_s14, %s21_s14   ;;  %s756_s13 = sphi %s787_s13, %s949_s13   ;;  %s752_s12 = sphi %s785_s12, %s948_s12   ;;  %s748_s11 = sphi %s783_s11, %s947_s11   ;;  %s744_s10 = sphi %s781_s10, %s946_s10   ;;  %s740_s9 = sphi %s779_s9, %s945_s9  }
   0x9   : > { %s33_s17 = sadd.s32 1, %s756_s13  ;;  %s42_s18 = sadd.s32 1, %s748_s11 }
   0xa   : > { %p35_p0 = scmp.ge.s32.totalorder %s33_s17, 2  ;;  %p49_p1 = scmp.ne.s32.totalorder %s748_s11, %s744_s10 }
   0xb   : > { %p50_p2 = scmp.eq.s32.totalorder %s760_s14, 0  ;;  %p55_p3 = scmp.ne.s32.totalorder %s744_s10, %s740_s9 }
   0xc   : > { %s951_s17 = smov (%p35_p0, %s33_s17), 0  ;;  %p56_p5 = scmp.eq.s32.totalorder %s509_s15, 0 }
   0xd   : > { %p820_p4 = por %p50_p2, %p49_p1  ;;  %s37_s20 = ssub.s32 %s756_s13, %s951_s17 }
   0xe   : > { %p109_p6 = scmp.eq.s32.totalorder %s509_s15, 1  ;;  %p40_p7 = scmp.eq.s32.totalorder %s37_s20, 0 }
   0xf   : > { %p826_p8 = por %p56_p5, %p55_p3  ;;  %p115_p10 = scmp.eq.s32.totalorder %s510_s16, 1 }
  0x10   : > { %p830_p9 = por %p109_p6, %p49_p1  ;;  %p512_p12 = scmp.ge.s32.totalorder %s760_s14, 2 }
  0x11   : > { %s835_s23 = scalar_select %p40_p7, %s748_s11, %s42_s18  }
  0x12   : > { %p837_p11 = por %p115_p10, %p55_p3  ;;  %p552_p13 = scmp.lt.s32.totalorder %s760_s14, 2 }
  0x13   : > { %s135_s25 = sand.u32 1, %s748_s11   ;;  %s530_s27 = sshll.u32 %s756_s13, 3 }
  0x14   : > { %s513_s26 = sshll.u32 %s135_s25, 3  ;;  %s146_s30 = scalar_lea.hbm %s937_s0, %s530_s27 }
  0x15   : > { %s139_s3 = scalar_lea.vmem [#allocation2], %s513_s26  ;;  %s148_s5 = sshll.u32 %s146_s30, 4  ;;  %s149_s5 = int_to_ptr.hbm [resolvable:$true] %s148_s5 }
  0x16   : > { %s150_s4 = sshll.u32 %s139_s3, 4  ;;  %p850_p0 = pnand %p552_p13, %p820_p4  ;;  %s151_s4 = int_to_ptr.vmem [resolvable:$true] %s150_s4 }
  0x17   : > { %p518_p1 = scmp.ge.s32.totalorder %s760_s14, 1  ;;  %p176_p2 = scmp.lt.s32.totalorder %s760_s14, 3 }
  0x18   : > { %s136_s7 = scalar_lea.sflag [#allocation3], %s135_s25  ;;  %s516_s8 = sshll.u32 %s135_s25, 1 }
  0x19   : > { %544 = dma.hbm_to_vmem [thread:$0]  (!%p850_p0), %s149_s5, 128, %s151_s4, %s136_s7  }
  0x1a   : > { %p177_p3 = pnand %p518_p1, %p176_p2  ;;  %s517_s15 = sshll.u32 %s756_s13, 1 }
  0x1b   : > { %s167_s20 = scalar_lea.hbm %s938_s1, %s517_s15  ;;  %s161_s26 = scalar_lea.vmem [#allocation5], %s516_s8 }
  0x1c   : > { %s171_s19 = sshll.u32 %s161_s26, 4  ;;  %s169_s27 = sshll.u32 %s167_s20, 4  ;;  %s172_s19 = int_to_ptr.vmem [resolvable:$true] %s171_s19  ;;  %s170_s27 = int_to_ptr.hbm [resolvable:$true] %s169_s27 }
  0x1d   : > { %s158_s28 = scalar_lea.sflag [#allocation6], %s135_s25  ;;  %180 = sbr.rel (%p177_p3) target bundleno = 322 (0x142), region = 28 }
  0x1e   : > { %547 = dma.hbm_to_vmem [thread:$0]  (!%p850_p0), %s170_s27, 32, %s172_s19, %s158_s28  }
  0x1f   : > { %s865_s29 = sand.u32 (!%p177_p3), 1, %s744_s10  }
  0x20   : > { %s519_s30 = sshll.u32 (!%p177_p3), %s865_s29, 3  ;;  %s183_s3 = scalar_lea.sflag (!%p177_p3), [#allocation3], %s865_s29 }
  0x21   : > { %s186_s4 = scalar_lea.vmem (!%p177_p3), [#allocation2], %s519_s30 }
  0x22   : > { %727 = dma.done.wait (%p826_p8), %s183_s3, 128  }
  0x23   : > { %729 = vsyncadd (%p826_p8), %s183_s3, 4294967168  ;;  %s520_s25 = sshll.u32 %s865_s29, 1  ;;  %s193_s5 = scalar_lea.sflag [#allocation6], %s865_s29 }
  0x24   : > { %s196_s6 = scalar_lea.vmem [#allocation5], %s520_s25 }
  0x25   : > { %731 = dma.done.wait (%p826_p8), %s193_s5, 32  }
  0x26   : > { %733 = vsyncadd (%p826_p8), %s193_s5, 4294967264  ;;  %v225_v0 = vld [vmem:[%s186_s4] sm:$0xff]  ;;  %vm233_vm0 = vcmask 1043456   ;;  %v280_v22 = vlaneseq  ;;  %v226_v23 = vld [vmem:[%s196_s6] sm:$0x3]  ;;  %v762_v37 = vmov 0.0  }
  0x27   : > { %228 = vst [vmem:[#allocation1] ss:$2 sm:$0xff] %v225_v0  ;;  %v282_v25 = vperm.slane %v226_v23, 0  ;;  %v283_v26 = vperm.slane %v226_v23, 1  ;;  %vm334_vm3 = vcmp.ge.s32.totalorder %v226_v23, 0  ;;  %vm335_vm4 = vcmp.lt.s32.totalorder %v226_v23, 4 }
  0x28   : > { %v884_v24 = vshrl.u32 %v280_v22, 7  ;;  %vm333_vm5 = vcmp.ne.s32.totalorder %v226_v23, 255  ;;  %vm336_vm6 = vmand %vm334_vm3, %vm335_vm4  ;;  %vm351_vm10 = vcmask 1040384   ;;  %s527_s21 = sshll.u32 %s752_s12, 1  ;;  %s222_s16 = scalar_lea.vmem [#allocation7], %s520_s25 }
  0x29   : > { %vm337_vm7 = vmand %vm333_vm5, %vm336_vm6  ;;  %s397_s15 = scalar_lea.hbm %s939_s2, %s527_s21  ;;  %s399_s18 = sshll.u32 %s222_s16, 4  ;;  %s400_s18 = int_to_ptr.vmem [resolvable:$true] %s399_s18 }
  0x2a   : > { %vm284_vm1 = vcmp.eq.s32.totalorder %v884_v24, %v282_v25  ;;  %vm285_vm2 = vcmp.eq.s32.totalorder %v884_v24, %v283_v26  ;;  %s401_s26 = sshll.u32 %s397_s15, 4  ;;  %vm380_vm11 = vcmp.eq.s32.totalorder %v884_v24, 0  ;;  %s386_s12 = scalar_lea.sflag [#allocation4], %s865_s29  ;;  %s402_s26 = int_to_ptr.hbm [resolvable:$true] %s401_s26 }
  0x2b   : > { %v522_v38 = vsel %vm284_vm1, 1.0, %v762_v37  ;;  %v523_v39 = vsel %vm285_vm2, 1.0, %v762_v37  ;;  %s688_s27 = sshra.s32 %s402_s26, 4  ;;  %s694_s4 = scalar_lea.hbm %s939_s2, 4  ;;  %s689_s27 = int_to_ptr.hbm [resolvable:$true] %s688_s27 }
  0x2c   : > { %s690_s28 = scalar_lea.hbm %s689_s27, 2  ;;  %p695_p7 = scmp.lt.s32.totalorder %s689_s27, %s939_s2 }
  0x2d   : > { %p691_p4 = scmp.ne.s32.totalorder %s689_s27, %s690_s28  ;;  %p696_p8 = scmp.lt.s32.totalorder %s694_s4, %s690_s28 }
  0x2e   : > { %v229_v1 = vld.sshfl [vmem:[#allocation1] sm:$0xff pattern:$0x75316420]  ;;  %v230_v2 = vld.sshfl [vmem:[#allocation1 + $0x8] sm:$0xff pattern:$0x75316420] }
  0x2f   : > { %v234_v3 = vsel %vm233_vm0, %v229_v1, -inf  ;;  %v241_v4 = vsel %vm233_vm0, %v230_v2, -inf  ;;  %p692_p5 = pnand %p691_p4, %p830_p9  ;;  %p697_p10 = por %p696_p8, %p695_p7 }
  0x30   : > { %v235_v5 = vrot.slane %v234_v3, 4  ;;  %v242_v6 = vrot.slane %v241_v4, 4 }
  0x31   : > { %p693_p6 = pneg %p692_p5 }
  0x32   : > { %v236_v7 = vmax.f32 %v234_v3, %v235_v5  ;;  %v243_v8 = vmax.f32 %v241_v4, %v242_v6 }
  0x33   : > { %p698_p13 = pnand %p697_p10, %p693_p6 }
  0x34   : > { %v237_v9 = vrot.slane %v236_v7, 2  ;;  %v244_v10 = vrot.slane %v243_v8, 2 }
  0x36   : > { %v238_v11 = vmax.f32 %v236_v7, %v237_v9  ;;  %v245_v12 = vmax.f32 %v243_v8, %v244_v10 }
  0x38   : > { %v239_v13 = vrot.slane %v238_v11, 1  ;;  %v246_v14 = vrot.slane %v245_v12, 1 }
  0x3a   : > { %v240_v15 = vmax.f32 %v238_v11, %v239_v13  ;;  %v247_v16 = vmax.f32 %v245_v12, %v246_v14  ;;  %v763_v11 = vmov 0  }
  0x3b   : > { %v338_v12 = vsel %vm337_vm7, 1, %v763_v11 }
  0x3c   : > { %v250_v17 = vrot.slane %v247_v16, 4  ;;  %v339_v16 = vperm.slane %v338_v12, 0 }
  0x3e   : > { %v251_v18 = vsel %vm233_vm0, %v240_v15, %v250_v17  ;;  %vm341_vm8 = vcmp.ne.s32.totalorder %v339_v16, 0 }
  0x3f   : > { %v253_v19 = vsub.f32 %v225_v0, %v251_v18  ;;  %v340_v18 = vperm.slane %v338_v12, 1 }
  0x41   : > { %v254_v20 = vmul.f32 1.442695, %v253_v19  ;;  %vm342_vm9 = vcmp.ne.s32.totalorder %v340_v18, 0 }
  0x43   : > { %604 = vpow2.f32 %v254_v20 }
  0x49   : > { %v605_v21 = vpop.eup %604 }
  0x4a   : > { %257 = vst [vmem:[#allocation1] ss:$2 sm:$0xff] %v605_v21 }
  0x51   : > { %v258_v27 = vld.sshfl [vmem:[#allocation1] sm:$0xff pattern:$0x75316420]  ;;  %v259_v28 = vld.sshfl [vmem:[#allocation1 + $0x8] sm:$0xff pattern:$0x75316420] }
  0x52   : > { %v262_v29 = vsel %vm233_vm0, %v258_v27, 0.0  ;;  %v269_v30 = vsel %vm233_vm0, %v259_v28, 0.0  ;;  %291 = vst [vmem:[#allocation1] ss:$2 sm:$0xff] %v253_v19 }
  0x53   : > { %v263_v31 = vrot.slane %v262_v29, 4  ;;  %v270_v32 = vrot.slane %v269_v30, 4 }
  0x55   : > { %v264_v33 = vadd.f32 %v263_v31, %v262_v29  ;;  %v271_v34 = vadd.f32 %v270_v32, %v269_v30  ;;  %v524_v30 = vsel %vm341_vm8, 1.0, %v762_v37  ;;  %v525_v31 = vsel %vm342_vm9, 1.0, %v762_v37 }
  0x56   : > { %v368_v32 = vsel %vm351_vm10, %v524_v30, 0.0 }
  0x57   : > { %v265_v35 = vrot.slane %v264_v33, 2  ;;  %v272_v36 = vrot.slane %v271_v34, 2 }
  0x59   : > { %v266_v40 = vadd.f32 %v265_v35, %v264_v33  ;;  %v273_v41 = vadd.f32 %v272_v36, %v271_v34  ;;  %v292_v42 = vld.sshfl [vmem:[#allocation1] sm:$0xff pattern:$0x75316420]  ;;  %v293_v43 = vld.sshfl [vmem:[#allocation1 + $0x8] sm:$0xff pattern:$0x75316420] }
  0x5a   : > { %v296_v44 = vmul.f32 %v522_v38, %v292_v42  ;;  %v297_v45 = vmul.f32 %v523_v39, %v293_v43  ;;  %v369_v33 = vsel %vm351_vm10, %v525_v31, 0.0 }
  0x5b   : > { %v267_v46 = vrot.slane %v266_v40, 1  ;;  %v274_v47 = vrot.slane %v273_v41, 1  ;;  %v370_v34 = vadd.f32 %v369_v33, %v368_v32 }
  0x5c   : > { %v298_v48 = vsel %vm233_vm0, %v296_v44, 0.0  ;;  %v305_v49 = vsel %vm233_vm0, %v297_v45, 0.0 }
  0x5d   : > { %v268_v50 = vadd.f32 %v267_v46, %v266_v40  ;;  %v275_v51 = vadd.f32 %v274_v47, %v273_v41  ;;  %v299_v52 = vrot.slane %v298_v48, 4  ;;  %v306_v53 = vrot.slane %v305_v49, 4 }
  0x5f   : > { %606 = vlog2.f32 %v268_v50  ;;  %v300_v54 = vadd.f32 %v299_v52, %v298_v48  ;;  %v307_v55 = vadd.f32 %v306_v53, %v305_v49 }
  0x60   : > { %608 = vlog2.f32 %v275_v51 }
  0x61   : > { %v301_v56 = vrot.slane %v300_v54, 2  ;;  %v308_v57 = vrot.slane %v307_v55, 2 }
  0x63   : > { %v302_v58 = vadd.f32 %v301_v56, %v300_v54  ;;  %v309_v59 = vadd.f32 %v308_v57, %v307_v55 }
  0x65   : > { %v607_v60 = vpop.eup %606  ;;  %v303_v61 = vrot.slane %v302_v58, 1  ;;  %v310_v62 = vrot.slane %v309_v59, 1 }
  0x66   : > { %v609_v63 = vpop.eup %608  ;;  %v277_v0 = vmul.f32 0.6931472, %v607_v60 }
  0x67   : > { %v279_v1 = vmul.f32 0.6931472, %v609_v63  ;;  %v304_v2 = vadd.f32 %v303_v61, %v302_v58  ;;  %v311_v3 = vadd.f32 %v310_v62, %v309_v59 }
  0x69   : > { %v312_v4 = vsub.f32 %v304_v2, %v277_v0  ;;  %v313_v5 = vsub.f32 %v311_v3, %v279_v1 }
  0x6b   : > { %v314_v6 = vmul.f32 1.442695, %v312_v4  ;;  %v316_v7 = vmul.f32 1.442695, %v313_v5 }
  0x6d   : > { %610 = vpow2.f32 %v314_v6 }
  0x6e   : > { %612 = vpow2.f32 %v316_v7 }
  0x73   : > { %v611_v8 = vpop.eup %610 }
  0x74   : > { %v613_v9 = vpop.eup %612  ;;  %v318_v10 = vsub.f32 1.0, %v611_v8 }
  0x75   : > { %v319_v13 = vsub.f32 1.0, %v613_v9 }
  0x76   : > { %v320_v14 = vmax.f32 %v318_v10, 0.0 }
  0x77   : > { %v321_v15 = vmax.f32 %v319_v13, 0.0 }
  0x78   : > { %v322_v17 = vmul.f32 %v320_v14, %v320_v14 }
  0x79   : > { %v323_v19 = vmul.f32 %v321_v15, %v321_v15 }
  0x7a   : > { %v345_v20 = vsub.f32 0.0, %v322_v17 }
  0x7b   : > { %v346_v21 = vsub.f32 0.0, %v323_v19 }
  0x7c   : > { %v347_v22 = vmul.f32 %v345_v20, %v312_v4 }
  0x7d   : > { %v348_v23 = vmul.f32 %v346_v21, %v313_v5 }
  0x7e   : > { %v349_v25 = vsel %vm341_vm8, %v347_v22, 0.0 }
  0x7f   : > { %v350_v26 = vsel %vm342_vm9, %v348_v23, 0.0  ;;  %v352_v27 = vsel %vm351_vm10, %v349_v25, 0.0 }
  0x80   : > { %v353_v28 = vsel %vm351_vm10, %v350_v26, 0.0 }
  0x81   : > { %v354_v29 = vadd.f32 %v353_v28, %v352_v27 }
  0x83   : > { %355 = vadd.xlane.f32.xlu0 %v354_v29 }
  0x8b   : > { %371 = vadd.xlane.f32.xlu0 %v370_v34 }
  0xf6   : > { %v356_v35 = vpop.xlane.xlu0 %355 }
  0xf7   : > { %v357_v36 = vrot.slane %v356_v35, 4 }
  0xf9   : > { %v358_v38 = vadd.f32 %v357_v36, %v356_v35 }
  0xfb   : > { %v359_v39 = vrot.slane %v358_v38, 2 }
  0xfd   : > { %v360_v40 = vadd.f32 %v359_v39, %v358_v38 }
  0xfe   : > { %v372_v41 = vpop.xlane.xlu0 %371 }
  0xff   : > { %v373_v42 = vrot.slane %v372_v41, 4  ;;  %v361_v43 = vrot.slane %v360_v40, 1 }
 0x101   : > { %v374_v44 = vadd.f32 %v373_v42, %v372_v41  ;;  %v362_v45 = vadd.f32 %v361_v43, %v360_v40 }
 0x103   : > { %v375_v46 = vrot.slane %v374_v44, 2  ;;  %531 = vpush %v362_v45 }
 0x105   : > { %v376_v37 = vadd.f32 %v375_v46, %v374_v44 }
 0x107   : > { %v377_v47 = vrot.slane %v376_v37, 1 }
 0x109   : > { %v378_v48 = vadd.f32 %v377_v47, %v376_v37 }
 0x10b   : > { %533 = vpush %v378_v48 }
 0x134   : > { %s532_s20 = spop %531 }
 0x135   : > { %v381_v49 = vstv %s532_s20 }
 0x13c   : > { %s534_s19 = spop %533 }
 0x13d   : > { %v382_v50 = vstv %s534_s19 }
 0x13e   : > { %v383_v51 = vsel %vm380_vm11, %v381_v49, %v382_v50 }
 0x13f   : > { %384 = vst [vmem:[%s222_s16] sm:$0x3] %v383_v51 }
 0x140   : > { %701 = shalt.err (!%p698_p13)
}
 0x141   : > { %539 = dma.vmem_to_hbm [thread:$0]  (%p830_p9), %s400_s18, 32, %s402_s26, %s386_s12  }
 0x142 PF: > { %s413_s29 = sand.u32 1, %s740_s9   ;;  %p549_p0 = pnand %p512_p12, %p837_p11 }
 0x143   : > { %s414_s6 = scalar_lea.sflag [#allocation4], %s413_s29 }
 0x144   : > { %p550_p1 = pneg %p549_p0 }
 0x146   : > { %735 = dma.done.wait (%p550_p1), %s414_s6, 32  }
 0x147   : > { %737 = vsyncadd (%p550_p1), %s414_s6, 4294967264  ;;  %s21_s14 = sadd.s32 1, %s760_s14   ;;  %s945_s9 = smov %s744_s10 }
 0x148   : > { %p18_p2 = scmp.ge.s32.totalorder %s21_s14, 4   ;;  %s946_s10 = smov %s748_s11 }
 0x149   : > { %s947_s11 = smov %s835_s23  ;;  %s948_s12 = smov %s756_s13 }
 0x14a   : > { %s949_s13 = smov %s951_s17  ;;  %20 = sbr.rel (!%p18_p2) target bundleno = 8 (0x8), region = 86 }
 0x14f   :  { %420 = vsyncpa [#allocation3], 1 }
 0x150   :  { %422 = vsyncpa [#allocation3 + $0x1], 1 }
 0x151   :  { %423 = vsyncpa [#allocation6], 1 }
 0x152   :  { %425 = vsyncpa [#allocation6 + $0x1], 1 }
 0x153   :  { %426 = vsyncpa [#allocation4], 1 }
 0x154   :  { %428 = vsyncpa [#allocation4 + $0x1], 1 }

</bundles_post_ra>
